<compile_context>
chip_gen: v6e
topology: v6e:2x2x1
jax: 0.10.0
libtpu: 0.0.40
codegen_flags: <defaults>
</compile_context>

<pallas_src>
import functools

import jax
import jax.numpy as jnp
from jax.experimental import pallas as pl
from jax.experimental.pallas import tpu as pltpu


# ----------------------------------------------------------------------------
# Generation-aware sizing helpers
# ----------------------------------------------------------------------------

@functools.lru_cache(maxsize=1)
def _vmem_capacity_bytes():
    """Physical VMEM of the current chip; conservative 64 MiB fallback
    (valid on v5e/v6e/v7x)."""
    try:
        info = pltpu.get_tpu_info()
        cap = getattr(info, "vmem_capacity_bytes", None)
        if cap:
            return int(cap)
    except Exception:
        pass
    return 64 << 20


def _compiler_params(dim_sem, block_bytes, scratch_bytes=0):
    """Scoped-VMEM budget ~= double-buffered tiles + scratch + headroom, capped
    at ~80% of the chip's physical VMEM (128 MiB parts can now use >64 MiB,
    v7x keeps headroom under its 64 MiB)."""
    cap = max(int(0.8 * _vmem_capacity_bytes()), 32 << 20)
    need = 2 * block_bytes + scratch_bytes + (8 << 20)
    vmem = int(min(max(need, 32 << 20), cap))
    return pltpu.CompilerParams(dimension_semantics=dim_sem,
                                vmem_limit_bytes=vmem)


def _pick_row_block(B, D, n_inputs, elem_bytes, sq_tiles=0):
    """VMEM-aware row/col tile of the logits matrix.

    Keeps (double-buffered inputs + per-step (bm,bm) f32 temporaries) under
    ~1/3 of physical VMEM, prefers multiples of 128 (MXU-native), and keeps
    >= 2 row blocks whenever B allows so the 'parallel' row axis can be
    sharded across both v7x TensorCores."""
    budget = max(_vmem_capacity_bytes() // 3, 8 << 20)
    for bm in (512, 384, 256, 128, 64, 32, 16, 8):
        if B % bm:
            continue
        if bm > max(B // 2, 8):          # keep R >= 2 whenever possible
            continue
        if 2 * n_inputs * bm * D * elem_bytes + sq_tiles * bm * bm * 4 <= budget:
            return bm
    return B


def _pick_lane_block(n):
    for p in (512, 256, 128):
        if n % p == 0:
            return p
    return n


def _pick_batch_block(B, bd, elem_bytes, acc_bytes):
    budget = max(_vmem_capacity_bytes() // 3, 8 << 20)
    for bk in (1024, 512, 256, 128, 64, 32, 16, 8):
        if B % bk:
            continue
        if bk > max(B // 2, 8):
            continue
        if 4 * bk * bd * elem_bytes + acc_bytes <= budget:
            return bk
    return B


# ----------------------------------------------------------------------------
# MXU-native dot helpers (no .T copies; f32 accumulation)
# ----------------------------------------------------------------------------

def _dot_nt(a, b):
    """a:(m,d), b:(n,d) -> (m,n); contracts last dims (a @ b.T without a copy)."""
    return jax.lax.dot_general(a, b, dimension_numbers=(((1,), (1,)), ((), ())),
                               preferred_element_type=jnp.float32)


def _dot_tn(a, b):
    """a:(k,m), b:(k,n) -> (m,n); contracts dim 0 (a.T @ b without a copy)."""
    return jax.lax.dot_general(a, b, dimension_numbers=(((0,), (0,)), ((), ())),
                               preferred_element_type=jnp.float32)


# ----------------------------------------------------------------------------
# Kernels
# ----------------------------------------------------------------------------

def _l2norm_kernel(x_ref, o_ref):
    # One-pass row L2 normalization (hoisted out of the (r,c) grids).
    # F.normalize(x, dim=1): x / max(||x||, 1e-12) == x * rsqrt(max(||x||^2, 1e-24))
    x = x_ref[...].astype(jnp.float32)
    sq = jnp.sum(x * x, axis=1, keepdims=True)
    o_ref[...] = (x * jax.lax.rsqrt(jnp.maximum(sq, jnp.float32(1e-24)))
                  ).astype(o_ref.dtype)


def _info_nce_kernel(q1_ref, q2_ref, k1_ref, k2_ref, o_ref,
                     m1, l1, m2, l2, pos, *, temperature):
    r = pl.program_id(0)
    c = pl.program_id(1)       # innermost (column / online-softmax) axis
    nc = pl.num_programs(1)
    inv_t = jnp.float32(1.0 / temperature)

    @pl.when(c == 0)
    def _():
        m1[...] = jnp.full(m1.shape, -jnp.inf, jnp.float32)
        m2[...] = jnp.full(m2.shape, -jnp.inf, jnp.float32)
        l1[...] = jnp.zeros(l1.shape, jnp.float32)
        l2[...] = jnp.zeros(l2.shape, jnp.float32)

    # Inputs are pre-normalized (and optionally bf16) — no per-step
    # normalization / casting here.
    q1, q2 = q1_ref[...], q2_ref[...]
    k1, k2 = k1_ref[...], k2_ref[...]

    # Four MXU tiles of the (2B,2B) logits matrix (no concatenate, no .T copy).
    s11 = _dot_nt(q1, k1) * inv_t
    s12 = _dot_nt(q1, k2) * inv_t
    s21 = _dot_nt(q2, k1) * inv_t
    s22 = _dot_nt(q2, k2) * inv_t

    # The global diagonal only intersects s11 and s22, and only when r == c.
    bm, bn = s11.shape
    lrow = jax.lax.broadcasted_iota(jnp.int32, (bm, bn), 0)
    lcol = jax.lax.broadcasted_iota(jnp.int32, (bm, bn), 1)
    local_diag = lrow == lcol
    diag = local_diag & (r == c)
    neg = jnp.float32(-1.0e9)
    s11 = jnp.where(diag, neg, s11)
    s22 = jnp.where(diag, neg, s22)

    # Online softmax, first-half rows (row = [s11 | s12]).
    m_blk1 = jnp.maximum(jnp.max(s11, axis=1, keepdims=True),
                         jnp.max(s12, axis=1, keepdims=True))
    m_new1 = jnp.maximum(m1[...], m_blk1)
    alpha1 = jnp.exp(m1[...] - m_new1)
    l1[...] = (alpha1 * l1[...]
               + jnp.sum(jnp.exp(s11 - m_new1), axis=1, keepdims=True)
               + jnp.sum(jnp.exp(s12 - m_new1), axis=1, keepdims=True))
    m1[...] = m_new1

    # Online softmax, second-half rows (row = [s21 | s22]).
    m_blk2 = jnp.maximum(jnp.max(s21, axis=1, keepdims=True),
                         jnp.max(s22, axis=1, keepdims=True))
    m_new2 = jnp.maximum(m2[...], m_blk2)
    alpha2 = jnp.exp(m2[...] - m_new2)
    l2[...] = (alpha2 * l2[...]
               + jnp.sum(jnp.exp(s21 - m_new2), axis=1, keepdims=True)
               + jnp.sum(jnp.exp(s22 - m_new2), axis=1, keepdims=True))
    m2[...] = m_new2

    # Positive logit for global row i (<B) and row i+B is <f1n[i],f2n[i]>/T,
    # i.e. the diagonal of s12 — extracted only on the r==c tile (the compute
    # lives inside the pl.when body, so off-diagonal steps pay nothing).
    # NOTE: relies on c being the innermost grid axis, so the diagonal tile is
    # visited before the c == nc-1 finalize step of the same row block.
    @pl.when(r == c)
    def _():
        pos[...] = jnp.sum(jnp.where(local_diag, s12, 0.0), axis=1, keepdims=True)

    @pl.when(c == nc - 1)
    def _():
        lse1 = m1[...] + jnp.log(l1[...])
        lse2 = m2[...] + jnp.log(l2[...])
        p = pos[...]
        o_ref[0, 0, 0] = jnp.sum(lse1 - p) + jnp.sum(lse2 - p)


def _nce_kernel(q_ref, k_ref, o_ref, m_sc, l_sc, pos, *, temperature):
    r = pl.program_id(0)
    c = pl.program_id(1)       # innermost axis
    nc = pl.num_programs(1)
    inv_t = jnp.float32(1.0 / temperature)

    @pl.when(c == 0)
    def _():
        m_sc[...] = jnp.full(m_sc.shape, -jnp.inf, jnp.float32)
        l_sc[...] = jnp.zeros(l_sc.shape, jnp.float32)

    s = _dot_nt(q_ref[...], k_ref[...]) * inv_t

    m_new = jnp.maximum(m_sc[...], jnp.max(s, axis=1, keepdims=True))
    alpha = jnp.exp(m_sc[...] - m_new)
    l_sc[...] = alpha * l_sc[...] + jnp.sum(jnp.exp(s - m_new), axis=1, keepdims=True)
    m_sc[...] = m_new

    @pl.when(r == c)
    def _():
        bm, bn = s.shape
        lrow = jax.lax.broadcasted_iota(jnp.int32, (bm, bn), 0)
        lcol = jax.lax.broadcasted_iota(jnp.int32, (bm, bn), 1)
        pos[...] = jnp.sum(jnp.where(lrow == lcol, s, 0.0), axis=1, keepdims=True)

    @pl.when(c == nc - 1)
    def _():
        o_ref[0, 0, 0] = jnp.sum(m_sc[...] + jnp.log(l_sc[...]) - pos[...])


def _cosine_kernel(f1_ref, f2_ref, o_ref):
    # Single fused pass (each row read exactly once) -> normalize in-kernel.
    f1 = f1_ref[...].astype(jnp.float32)
    f2 = f2_ref[...].astype(jnp.float32)
    n1 = jax.lax.rsqrt(jnp.maximum(jnp.sum(f1 * f1, axis=1, keepdims=True),
                                   jnp.float32(1e-24)))
    n2 = jax.lax.rsqrt(jnp.maximum(jnp.sum(f2 * f2, axis=1, keepdims=True),
                                   jnp.float32(1e-24)))
    o_ref[0, 0, 0] = jnp.sum((f1 * f2) * (n1 * n2))


def _colstats_kernel(x_ref, mean_ref, istd_ref, s_acc, ss_acc, *, batch):
    # Batch-tiled column mean / inverse std (no full-batch VMEM block, so it
    # cannot VMEM-OOM on v7x at large B).
    k = pl.program_id(1)
    nk = pl.num_programs(1)

    @pl.when(k == 0)
    def _():
        s_acc[...] = jnp.zeros(s_acc.shape, jnp.float32)
        ss_acc[...] = jnp.zeros(ss_acc.shape, jnp.float32)

    x = x_ref[...].astype(jnp.float32)
    s_acc[...] += jnp.sum(x, axis=0, keepdims=True)
    ss_acc[...] += jnp.sum(x * x, axis=0, keepdims=True)

    @pl.when(k == nk - 1)
    def _():
        mean = s_acc[...] / jnp.float32(batch)
        # torch.std default: unbiased (N-1), no eps (zero-variance columns or
        # B==1 produce inf/nan exactly like the PyTorch reference).
        var = (ss_acc[...] - jnp.float32(batch) * mean * mean) / jnp.float32(batch - 1)
        mean_ref[...] = mean
        istd_ref[...] = jax.lax.rsqrt(var)


def _standardize_kernel(x_ref, mean_ref, istd_ref, o_ref):
    # One-pass (x - mean) * istd, stored once (bf16 by default) so the
    # (d1,d2,k) grid never re-standardizes a tile.
    x = x_ref[...].astype(jnp.float32)
    o_ref[...] = ((x - mean_ref[...]) * istd_ref[...]).astype(o_ref.dtype)


def _barlow_kernel(z1_ref, z2_ref, o_ref, c_acc, *, lambda_param, batch):
    d1 = pl.program_id(0)
    d2 = pl.program_id(1)
    k = pl.program_id(2)
    nk = pl.num_programs(2)

    @pl.when(k == 0)
    def _():
        c_acc[...] = jnp.zeros(c_acc.shape, jnp.float32)

    # Pre-standardized inputs: pure tiled MXU matmul, f32 accumulation.
    c_acc[...] += _dot_tn(z1_ref[...], z2_ref[...])

    @pl.when(k == nk - 1)
    def _():
        c = c_acc[...] / jnp.float32(batch)
        total_sq = jnp.sum(c * c)
        bd1, bd2 = c.shape
        lrow = jax.lax.broadcasted_iota(jnp.int32, (bd1, bd2), 0)
        lcol = jax.lax.broadcasted_iota(jnp.int32, (bd1, bd2), 1)
        diag = (lrow == lcol) & (d1 == d2)          # global diagonal tile only
        diag_c = jnp.where(diag, c, 0.0)
        on_diag = jnp.sum(jnp.where(diag, (c - 1.0) ** 2, 0.0))
        diag_sq = jnp.sum(diag_c * diag_c)
        # off_diag = sum(c^2) - sum(diag(c)^2)  (no NxN off-diagonal mask sum)
        o_ref[0, 0, 0, 0] = on_diag + jnp.float32(lambda_param) * (total_sq - diag_sq)


# ----------------------------------------------------------------------------
# Wrapper
# ----------------------------------------------------------------------------

class ContrastiveLoss:
    """JAX/Pallas port of the PyTorch ContrastiveLoss module."""

    def __init__(self, loss_type='info_nce', temperature=0.5, lambda_param=0.005,
                 use_bf16_matmul=True, row_block=None, feat_block=None,
                 batch_block=None):
        self.loss_type = loss_type
        self.temperature = float(temperature)
        self.lambda_param = float(lambda_param)
        # Default: bf16 MXU operands with f32 accumulation, and bf16
        # pre-normalized/standardized features in HBM (peak MXU rate on
        # v6e/v7x, half the DMA bytes and VMEM footprint).  Set
        # use_bf16_matmul=False for exact f32 reference semantics.
        self._store_dtype = jnp.bfloat16 if use_bf16_matmul else jnp.float32
        self.row_block = row_block
        self.feat_block = feat_block
        self.batch_block = batch_block

    # -- shared: one-pass L2 normalization (hoisted out of the (r,c) grid) ----
    def _prenorm(self, x, bm):
        B, D = x.shape
        return pl.pallas_call(
            _l2norm_kernel,
            out_shape=jax.ShapeDtypeStruct((B, D), self._store_dtype),
            grid=(B // bm,),
            in_specs=[pl.BlockSpec((bm, D), lambda r: (r, 0))],
            out_specs=pl.BlockSpec((bm, D), lambda r: (r, 0)),
            compiler_params=_compiler_params(("parallel",), 2 * bm * D * 4),
        )(x)

    # -- info_nce ------------------------------------------------------------
    def _info_nce(self, f1, f2):
        B, D = f1.shape
        eb = jnp.dtype(self._store_dtype).itemsize
        bm = self.row_block or _pick_row_block(B, D, n_inputs=4, elem_bytes=eb,
                                               sq_tiles=4)
        assert B % bm == 0, (B, bm)
        R = B // bm
        f1n = self._prenorm(f1, bm)
        f2n = self._prenorm(f2, bm)
        kernel = functools.partial(_info_nce_kernel, temperature=self.temperature)
        block_bytes = 4 * bm * D * eb
        scratch_bytes = 5 * bm * 4 + 4 * bm * bm * 4
        # NOTE: the c axis must stay innermost (pos scratch is written on r==c
        # and consumed at c==nc-1 of the same row block).
        # TODO(synk): if profiling shows exposed DMA at small D on v5e/v6e, add
        # pipeline_mode=pl.Buffered(3) to the column-block in_specs.
        partials = pl.pallas_call(
            kernel,
            out_shape=jax.ShapeDtypeStruct((R, 1, 1), jnp.float32),
            grid=(R, R),
            in_specs=[
                pl.BlockSpec((bm, D), lambda r, c: (r, 0)),   # f1n row block
                pl.BlockSpec((bm, D), lambda r, c: (r, 0)),   # f2n row block
                pl.BlockSpec((bm, D), lambda r, c: (c, 0)),   # f1n col block
                pl.BlockSpec((bm, D), lambda r, c: (c, 0)),   # f2n col block
            ],
            out_specs=pl.BlockSpec((1, 1, 1), lambda r, c: (r, 0, 0)),
            scratch_shapes=[pltpu.VMEM((bm, 1), jnp.float32)] * 5,
            compiler_params=_compiler_params(("parallel", "arbitrary"),
                                             block_bytes, scratch_bytes),
        )(f1n, f2n, f1n, f2n)
        return jnp.sum(partials) / (2 * B)

    # -- nce -----------------------------------------------------------------
    def _nce(self, f1, f2):
        B, D = f1.shape
        eb = jnp.dtype(self._store_dtype).itemsize
        bm = self.row_block or _pick_row_block(B, D, n_inputs=2, elem_bytes=eb,
                                               sq_tiles=1)
        assert B % bm == 0, (B, bm)
        R = B // bm
        f1n = self._prenorm(f1, bm)
        f2n = self._prenorm(f2, bm)
        kernel = functools.partial(_nce_kernel, temperature=self.temperature)
        block_bytes = 2 * bm * D * eb
        scratch_bytes = 3 * bm * 4 + bm * bm * 4
        partials = pl.pallas_call(
            kernel,
            out_shape=jax.ShapeDtypeStruct((R, 1, 1), jnp.float32),
            grid=(R, R),
            in_specs=[
                pl.BlockSpec((bm, D), lambda r, c: (r, 0)),   # f1n row block
                pl.BlockSpec((bm, D), lambda r, c: (c, 0)),   # f2n col block
            ],
            out_specs=pl.BlockSpec((1, 1, 1), lambda r, c: (r, 0, 0)),
            scratch_shapes=[pltpu.VMEM((bm, 1), jnp.float32)] * 3,
            compiler_params=_compiler_params(("parallel", "arbitrary"),
                                             block_bytes, scratch_bytes),
        )(f1n, f2n)
        return jnp.sum(partials) / B

    # -- cosine --------------------------------------------------------------
    def _cosine(self, f1, f2):
        B, D = f1.shape
        bm = self.row_block or _pick_row_block(B, D, n_inputs=2, elem_bytes=4)
        assert B % bm == 0, (B, bm)
        R = B // bm
        partials = pl.pallas_call(
            _cosine_kernel,
            out_shape=jax.ShapeDtypeStruct((R, 1, 1), jnp.float32),
            grid=(R,),
            in_specs=[
                pl.BlockSpec((bm, D), lambda r: (r, 0)),
                pl.BlockSpec((bm, D), lambda r: (r, 0)),
            ],
            out_specs=pl.BlockSpec((1, 1, 1), lambda r: (r, 0, 0)),
            compiler_params=_compiler_params(("parallel",), 2 * bm * D * 4),
        )(f1, f2)
        return -jnp.sum(partials) / B

    # -- barlow --------------------------------------------------------------
    def _barlow(self, f1, f2):
        B, D = f1.shape
        eb = jnp.dtype(self._store_dtype).itemsize
        bd = self.feat_block or _pick_lane_block(D)
        assert D % bd == 0, (D, bd)
        nd = D // bd
        bk = self.batch_block or _pick_batch_block(B, bd, eb, acc_bytes=bd * bd * 4)
        assert B % bk == 0, (B, bk)
        nk = B // bk

        def colstats(x):
            return pl.pallas_call(
                functools.partial(_colstats_kernel, batch=B),
                out_shape=(jax.ShapeDtypeStruct((1, D), jnp.float32),
                           jax.ShapeDtypeStruct((1, D), jnp.float32)),
                grid=(nd, nk),
                in_specs=[pl.BlockSpec((bk, bd), lambda d, k: (k, d))],
                out_specs=(pl.BlockSpec((1, bd), lambda d, k: (0, d)),
                           pl.BlockSpec((1, bd), lambda d, k: (0, d))),
                scratch_shapes=[pltpu.VMEM((1, bd), jnp.float32)] * 2,
                compiler_params=_compiler_params(("parallel", "arbitrary"),
                                                 bk * bd * 4 + 2 * bd * 4,
                                                 2 * bd * 4),
            )(x)

        def standardize(x, mean, istd):
            return pl.pallas_call(
                _standardize_kernel,
                out_shape=jax.ShapeDtypeStruct((B, D), self._store_dtype),
                grid=(nk, nd),
                in_specs=[pl.BlockSpec((bk, bd), lambda k, d: (k, d)),
                          pl.BlockSpec((1, bd), lambda k, d: (0, d)),
                          pl.BlockSpec((1, bd), lambda k, d: (0, d))],
                out_specs=pl.BlockSpec((bk, bd), lambda k, d: (k, d)),
                compiler_params=_compiler_params(("parallel", "parallel"),
                                                 2 * bk * bd * 4 + 2 * bd * 4),
            )(x, mean, istd)

        m1, s1 = colstats(f1)
        m2, s2 = colstats(f2)
        z1 = standardize(f1, m1, s1)
        z2 = standardize(f2, m2, s2)

        kernel = functools.partial(_barlow_kernel, lambda_param=self.lambda_param,
                                   batch=B)
        block_bytes = 2 * bk * bd * eb
        scratch_bytes = bd * bd * 4
        partials = pl.pallas_call(
            kernel,
            out_shape=jax.ShapeDtypeStruct((nd, nd, 1, 1), jnp.float32),
            grid=(nd, nd, nk),
            in_specs=[
                pl.BlockSpec((bk, bd), lambda d1, d2, k: (k, d1)),   # z1 tile
                pl.BlockSpec((bk, bd), lambda d1, d2, k: (k, d2)),   # z2 tile
            ],
            out_specs=pl.BlockSpec((1, 1, 1, 1), lambda d1, d2, k: (d1, d2, 0, 0)),
            scratch_shapes=[pltpu.VMEM((bd, bd), jnp.float32)],
            compiler_params=_compiler_params(("parallel", "parallel", "arbitrary"),
                                             block_bytes, scratch_bytes),
        )(z1, z2)
        return jnp.sum(partials)

    def __call__(self, f1, f2):
        f1 = jnp.asarray(f1, jnp.float32)
        f2 = jnp.asarray(f2, jnp.float32)
        if self.loss_type == 'info_nce':
            return self._info_nce(f1, f2)
        elif self.loss_type == 'nce':
            return self._nce(f1, f2)
        elif self.loss_type == 'cosine':
            return self._cosine(f1, f2)
        elif self.loss_type == 'barlow':
            return self._barlow(f1, f2)
        else:
            raise ValueError(f'Unknown loss type: {self.loss_type}')


# ----------------------------------------------------------------------------
# Pure-JAX references (correctness checks in the demo)
# ----------------------------------------------------------------------------

def _l2n_ref(x, eps=1e-12):
    n = jnp.sqrt(jnp.sum(x * x, axis=1, keepdims=True))
    return x / jnp.maximum(n, eps)


def _ref_info_nce(f1, f2, t):
    b = f1.shape[0]
    feats = jnp.concatenate([_l2n_ref(f1), _l2n_ref(f2)], axis=0)
    logits = feats @ feats.T / t
    n = 2 * b
    logits = jnp.where(jnp.eye(n, dtype=bool), -1.0e9, logits)
    pos = (jnp.arange(n) + b) % n
    lse = jax.nn.logsumexp(logits, axis=1)
    return jnp.mean(lse - logits[jnp.arange(n), pos])


def _ref_nce(f1, f2, t):
    logits = _l2n_ref(f1) @ _l2n_ref(f2).T / t
    return jnp.mean(jax.nn.logsumexp(logits, axis=1) - jnp.diag(logits))


def _ref_cosine(f1, f2):
    return -jnp.mean(jnp.sum(_l2n_ref(f1) * _l2n_ref(f2), axis=1))


def _ref_barlow(f1, f2, lam):
    b = f1.shape[0]
    z1 = (f1 - f1.mean(0)) / f1.std(0, ddof=1)
    z2 = (f2 - f2.mean(0)) / f2.std(0, ddof=1)
    c = z1.T @ z2 / b
    on = jnp.sum((jnp.diag(c) - 1.0) ** 2)
    off = jnp.sum(c ** 2) - jnp.sum(jnp.diag(c) ** 2)
    return on + lam * off


# ----------------------------------------------------------------------------
# Demo / smoke test
# ----------------------------------------------------------------------------

if __name__ == "__main__":
    key = jax.random.PRNGKey(0)
    k1, k2 = jax.random.split(key)

    B, D = 16, 32
    f1 = jax.random.normal(k1, (B, D), dtype=jnp.float32)
    f2 = jax.random.normal(k2, (B, D), dtype=jnp.float32)

    refs = {
        'info_nce': _ref_info_nce(f1, f2, 0.5),
        'nce': _ref_nce(f1, f2, 0.5),
        'cosine': _ref_cosine(f1, f2),
        'barlow': _ref_barlow(f1, f2, 0.005),
    }

    # Auto-picked blocks at this size: bm=8 (R=2), bk=8 (nk=2) -- exercises the
    # multi-tile grid, online softmax and K-axis accumulation paths.
    # Check the exact f32 path (tight tolerance) and the bf16 default
    # (looser tolerance -- MXU operands are bf16 with f32 accumulation).
    for use_bf16, tol in ((False, 2e-3), (True, 3e-2)):
        for lt in ('info_nce', 'nce', 'cosine', 'barlow'):
            loss = ContrastiveLoss(loss_type=lt, use_bf16_matmul=use_bf16)(f1, f2)
            loss = jax.block_until_ready(loss)
            got, ref = float(loss), float(refs[lt])
            assert abs(got - ref) <= tol + tol * abs(ref), (lt, use_bf16, got, ref)

    # Default configuration (bf16, auto-picked blocks) matching PyTorch defaults.
    l_default = ContrastiveLoss()(f1, f2)
    jax.block_until_ready(l_default)

    print("KERNEL_OK")
</pallas_src>

<mosaic_0001>
module attributes {stable_mosaic.version = 11 : i64} {
  func.func @_l2norm_kernel(%arg0: i32, %arg1: memref<8x32xf32, #tpu.memory_space<vmem>>, %arg2: memref<8x32xf32, #tpu.memory_space<vmem>>) attributes {dimension_semantics = [#tpu.dimension_semantics<parallel>], iteration_bounds = array<i64: 2>, scalar_prefetch = 0 : i64, scratch_operands = 0 : i64, tpu.core_type = #tpu.core_type<tc>, window_params = [{transform_indices = @transform_0, window_bounds = array<i64: 8, 32>}, {transform_indices = @transform_1, window_bounds = array<i64: 8, 32>}]} {
    %c0 = arith.constant 0 : index
    %c0_0 = arith.constant 0 : index
    %0 = vector.load %arg1[%c0, %c0_0] : memref<8x32xf32, #tpu.memory_space<vmem>>, vector<8x32xf32>
    %1 = arith.mulf %0, %0 : vector<8x32xf32>
    %cst = arith.constant dense<0.000000e+00> : vector<8xf32>
    %2 = vector.multi_reduction <add>, %1, %cst [1] : vector<8x32xf32> to vector<8xf32>
    %3 = vector.shape_cast %2 : vector<8xf32> to vector<8x1xf32>
    %cst_1 = arith.constant 1.000000e-24 : f32
    %4 = vector.broadcast %cst_1 : f32 to vector<8x1xf32>
    %5 = arith.maximumf %3, %4 : vector<8x1xf32>
    %6 = math.rsqrt %5 : vector<8x1xf32>
    %7 = vector.broadcast %6 : vector<8x1xf32> to vector<8x32xf32>
    %8 = arith.mulf %0, %7 : vector<8x32xf32>
    %c0_2 = arith.constant 0 : index
    %c0_3 = arith.constant 0 : index
    %9 = vector.load %arg2[%c0_2, %c0_3] : memref<8x32xf32, #tpu.memory_space<vmem>>, vector<8x32xf32>
    tpu.vector_store %arg2[%c0_2, %c0_3], %8 {strides = array<i32>} : memref<8x32xf32, #tpu.memory_space<vmem>>, vector<8x32xf32>,
    return
  }
  func.func @transform_0(%arg0: i32) -> (i32, i32) {
    %c0_i32 = arith.constant 0 : i32
    %c0_i32_0 = arith.constant 0 : i32
    return %arg0, %c0_i32 : i32, i32
  }
  func.func @transform_1(%arg0: i32) -> (i32, i32) {
    %c0_i32 = arith.constant 0 : i32
    %c0_i32_0 = arith.constant 0 : i32
    return %arg0, %c0_i32 : i32, i32
  }
}

</mosaic_0001>

<bundles_post_ra>
// kernel: tpu_custom_call.1
= control target key start
LH: loop header
LB: loop body
LE: loop exit
PB: predicated region body
PF: predicated region fallthrough
CT: control target
= control target key end

     0   :  { %6 = vsyncpa [#allocation3], 0  ;;  %s533_s0 = inlined_call_operand.hbm [shape: f32[16,32], index: 0, kind: input, shape index: {}]   ;;  %s534_s1 = inlined_call_operand.hbm [shape: f32[16,32], index: 1, kind: output, shape index: {}]  }
   0x1   :  { %8 = vsyncpa [#allocation3 + $0x1], 0 }
   0x2   :  { %9 = vsyncpa [#allocation4], 0 }
   0x3   :  { %11 = vsyncpa [#allocation4 + $0x1], 0  ;;  %s392_s6 = smov 0   ;;  %s394_s7 = smov 0  }
   0x4   :  { %s396_s8 = smov 0   ;;  %s398_s9 = smov 0  }
   0x5 LB: > { %s413_s10 = sadd.s32 4294967295, %s378_s9   ;;  %s226_s11 = sadd.s32 4294967294, %s378_s9   ;;  %s378_s9 = sphi %s398_s9, %s551_s9   ;;  %s374_s8 = sphi %s396_s8, %s550_s8   ;;  %s370_s7 = sphi %s394_s7, %s549_s7   ;;  %s366_s6 = sphi %s392_s6, %s548_s6  }
   0x6   : > { %s417_s12 = sadd.s32 1, %s378_s9   ;;  %s24_s13 = sadd.s32 1, %s374_s8 }
   0x7   : > { %s21_s14 = ssub.s32 %s378_s9, %s417_s12  ;;  %p31_p0 = scmp.ne.s32.totalorder %s374_s8, %s370_s7 }
   0x8   : > { %p22_p1 = scmp.eq.s32.totalorder %s21_s14, 0  ;;  %p32_p2 = scmp.eq.s32.totalorder %s378_s9, 0 }
   0x9   : > { %p37_p3 = scmp.ne.s32.totalorder %s370_s7, %s366_s6  ;;  %p38_p4 = scmp.eq.s32.totalorder %s413_s10, 0 }
   0xa   : > { %s429_s15 = scalar_select %p22_p1, %s374_s8, %s24_s13  }
   0xb   : > { %p431_p5 = por %p32_p2, %p31_p0  ;;  %p435_p6 = por %p38_p4, %p37_p3 }
   0xc   : > { %p61_p7 = scmp.eq.s32.totalorder %s413_s10, 1  ;;  %p67_p8 = scmp.eq.s32.totalorder %s226_s11, 1 }
   0xd   : > { %s538_s17 = scalar_select %p435_p6, 1, 0 }
   0xe   : > { %p250_p10 = scmp.lt.s32.totalorder %s378_s9, 2  ;;  %p442_p11 = por %p61_p7, %p31_p0 }
   0xf   : > { %p446_p12 = por %p67_p8, %p37_p3  ;;  %s87_s20 = sand.u32 1, %s374_s8  }
  0x10   : > { %s539_s18 = scalar_select %p442_p11, 1, 0 }
  0x11   : > { %s540_s19 = scalar_select %p446_p12, 1, 0 }
  0x12   : > { %s230_s21 = sshll.u32 %s378_s9, 7  ;;  %s229_s22 = sshll.u32 %s87_s20, 3 }
  0x13   : > { %s455_s25 = scalar_lea.hbm %s533_s0, %s230_s21  ;;  %s91_s26 = scalar_lea.vmem [#allocation2], %s229_s22 }
  0x14   : > { %s98_s27 = sshll.u32 %s91_s26, 4  ;;  %p459_p13 = pnand %p250_p10, %p431_p5  ;;  %s463_s27 = int_to_ptr.vmem [resolvable:$true] %s98_s27 }
  0x15   : > { %s88_s29 = scalar_lea.sflag [#allocation3], %s87_s20  ;;  %s286_s30 = scalar_lea.hbm %s455_s25, 128 }
  0x16   : > { %p287_p2 = scmp.ne.s32.totalorder %s455_s25, %s286_s30  ;;  %p288_p3 = pneg %p459_p13 }
  0x17   : > { %s291_s4 = scalar_lea.hbm %s533_s0, 256  ;;  %p292_p5 = scmp.lt.s32.totalorder %s455_s25, %s533_s0 }
  0x18   : > { %p289_p4 = pnand %p288_p3, %p287_p2  ;;  %p293_p8 = scmp.lt.s32.totalorder %s291_s4, %s286_s30 }
  0x1a   : > { %p290_p7 = pneg %p289_p4  ;;  %p294_p10 = por %p293_p8, %p292_p5 }
  0x1c   : > { %p295_p9 = pnand %p294_p10, %p290_p7 }
  0x1e   : > { %298 = shalt.err (!%p295_p9)
}
  0x1f   : > { %s299_s13 = scalar_lea.vmem %s463_s27, 128  ;;  %s380_s14 = smov [#allocation2]  }
  0x20   : > { %p300_p0 = scmp.ne.s32.totalorder %s463_s27, %s299_s13  ;;  %s304_s16 = sshll.u32 %s380_s14, 4  ;;  %s305_s16 = int_to_ptr.vmem [resolvable:$false] %s304_s16 }
  0x21   : > { %s306_s20 = scalar_lea.vmem %s305_s16, 256  ;;  %p307_p4 = scmp.lt.s32.totalorder %s463_s27, %s305_s16 }
  0x22   : > { %p302_p1 = pnand %p300_p0, %p288_p3  ;;  %p308_p12 = scmp.lt.s32.totalorder %s306_s20, %s299_s13 }
  0x24   : > { %p303_p2 = pneg %p302_p1  ;;  %p309_p11 = por %p308_p12, %p307_p4 }
  0x26   : > { %p310_p6 = pnand %p309_p11, %p303_p2 }
  0x28   : > { %313 = shalt.err (!%p310_p6)
}
  0x29   : > { %245 = dma.hbm_to_vmem [thread:$0]  (!%p459_p13), %s455_s25, 128, %s463_s27, %s88_s29  }
  0x2a   : > { %p542_p9 = scmp.lt.s32.totalorder %s378_s9, 3  ;;  %p543_p7 = scmp.ge.s32.totalorder %s378_s9, 1 }
  0x2c   : > { %p104_p0 = pnand %p543_p7, %p542_p9 }
  0x2d   : > { %s490_s21 = sand.u32 (!%p104_p0), 1, %s370_s7   ;;  %p544_p6 = scmp.ne.s32.totalorder (!%p104_p0), %s538_s17, 0 }
  0x2e   : > { %107 = sbr.rel (%p104_p0) target bundleno = 225 (0xe1), region = 24  ;;  %s232_s22 = sshll.u32 (!%p104_p0), %s490_s21, 3 }
  0x2f   : > { %s110_s23 = scalar_lea.sflag (!%p104_p0), [#allocation3], %s490_s21  ;;  %s113_s24 = scalar_lea.vmem (!%p104_p0), [#allocation2], %s232_s22 }
  0x33   : > { %357 = dma.done.wait (%p544_p6), %s110_s23, 128  }
  0x34   : > { %359 = vsyncadd (%p544_p6), %s110_s23, 4294967168  ;;  %v132_v0 = vld [vmem:[%s113_s24] sm:$0xff]  ;;  %vm134_vm0 = vcmask 261120   ;;  %s235_s25 = sshll.u32 %s413_s10, 7  ;;  %s131_s26 = scalar_lea.vmem [#allocation5], %s232_s22 }
  0x35   : > { %v133_v1 = vmul.f32 %v132_v0, %v132_v0  ;;  %s156_s27 = sshll.u32 %s131_s26, 4  ;;  %s154_s17 = scalar_lea.hbm %s534_s1, %s235_s25  ;;  %s157_s27 = int_to_ptr.vmem [resolvable:$true] %s156_s27 }
  0x36   : > { %s143_s30 = scalar_lea.sflag [#allocation4], %s490_s21  ;;  %s314_s2 = scalar_lea.vmem %s157_s27, 128 }
  0x37   : > { %v135_v2 = vsel %vm134_vm0, %v133_v1, 0.0  ;;  %p315_p11 = scmp.ne.s32.totalorder %s157_s27, %s314_s2  ;;  %p545_p12 = scmp.ne.s32.totalorder %s539_s18, 0 }
  0x38   : > { %136 = vadd.xlane.f32.xlu0 %v135_v2  ;;  %s381_s3 = smov [#allocation5]  }
  0x39   : > { %p316_p13 = pnand %p315_p11, %p545_p12  ;;  %s318_s4 = sshll.u32 %s381_s3, 4  ;;  %s319_s4 = int_to_ptr.vmem [resolvable:$false] %s318_s4 }
  0x3a   : > { %s320_s10 = scalar_lea.vmem %s319_s4, 256  ;;  %p321_p3 = scmp.lt.s32.totalorder %s157_s27, %s319_s4 }
  0x3b   : > { %p317_p1 = pneg %p316_p13  ;;  %p322_p5 = scmp.lt.s32.totalorder %s320_s10, %s314_s2 }
  0x3d   : > { %p323_p8 = por %p322_p5, %p321_p3 }
  0x3f   : > { %p324_p10 = pnand %p323_p8, %p317_p1 }
  0xc1   : > { %v137_v3 = vpop.xlane.xlu0 %136 }
  0xc2   : > { %v138_v4 = vmax.f32 %v137_v3, 1e-24 }
  0xc4   : > { %284 = vrsqrt.f32 %v138_v4 }
  0xd1   : > { %v285_v5 = vpop.eup %284 }
  0xd2   : > { %v140_v6 = vmul.f32 %v285_v5, %v132_v0 }
  0xd4   : > { %141 = vst.msk [vmem:[%s131_s26] sm:$0xff] %vm134_vm0, %v140_v6 }
  0xd5   : > { %327 = shalt.err (!%p324_p10)
}
  0xd6   : > { %s328_s5 = scalar_lea.hbm %s154_s17, 128  ;;  %s332_s14 = scalar_lea.hbm %s534_s1, 256 }
  0xd7   : > { %p329_p2 = scmp.ne.s32.totalorder %s154_s17, %s328_s5  ;;  %p333_p7 = scmp.lt.s32.totalorder %s154_s17, %s534_s1 }
  0xd8   : > { %p334_p0 = scmp.lt.s32.totalorder %s332_s14, %s328_s5 }
  0xd9   : > { %p330_p4 = pnand %p329_p2, %p545_p12 }
  0xda   : > { %p335_p6 = por %p334_p0, %p333_p7 }
  0xdb   : > { %p331_p9 = pneg %p330_p4 }
  0xdd   : > { %p336_p11 = pnand %p335_p6, %p331_p9 }
  0xdf   : > { %339 = shalt.err (!%p336_p11)
}
  0xe0   : > { %240 = dma.vmem_to_hbm [thread:$0]  (%p545_p12), %s157_s27, 128, %s154_s17, %s143_s30  }
  0xe1 PF: > { %s168_s21 = sand.u32 1, %s366_s6   ;;  %p546_p13 = scmp.ne.s32.totalorder %s540_s19, 0 }
  0xe2   : > { %p547_p1 = scmp.ge.s32.totalorder %s378_s9, 2  ;;  %s169_s22 = scalar_lea.sflag [#allocation4], %s168_s21 }
  0xe4   : > { %p247_p3 = pnand %p547_p1, %p546_p13 }
  0xe6   : > { %p248_p5 = pneg %p247_p3 }
  0xe8   : > { %361 = dma.done.wait (%p248_p5), %s169_s22, 128  }
  0xe9   : > { %363 = vsyncadd (%p248_p5), %s169_s22, 4294967168  ;;  %p14_p8 = scmp.ge.s32.totalorder %s417_s12, 4   ;;  %s548_s6 = smov %s370_s7 }
  0xea   : > { %s549_s7 = smov %s374_s8  ;;  %s550_s8 = smov %s429_s15 }
  0xeb   : > { %s551_s9 = smov %s417_s12  ;;  %16 = sbr.rel (!%p14_p8) target bundleno = 5 (0x5), region = 69 }
  0xf0   :  { %174 = vsyncpa [#allocation3], 1 }
  0xf1   :  { %176 = vsyncpa [#allocation3 + $0x1], 1 }
  0xf2   :  { %177 = vsyncpa [#allocation4], 1 }
  0xf3   :  { %179 = vsyncpa [#allocation4 + $0x1], 1 }

</bundles_post_ra>
